<compile_context>
chip_gen: v5e
topology: v5e:2x2
jax: 0.10.0
libtpu: 0.0.40
codegen_flags: <defaults>
</compile_context>

<pallas_src>
import functools
import math

import numpy as np

import jax
import jax.numpy as jnp
from jax.experimental import pallas as pl
from jax.experimental.pallas import tpu as pltpu


_TAP_MAX_EFF_K = 64          # <= this effective kernel length -> VPU tap path


# ----------------------------------------------------------------------------
# Filter construction (tiny, plain JAX — mirrors SincConv_lowpass.forward)
# ----------------------------------------------------------------------------
def _make_sinc_lowpass_filter(kernel_size: int, sample_rate: int,
                              band_hz: float) -> jnp.ndarray:
    half = kernel_size // 2
    n_lin = jnp.linspace(0.0, kernel_size / 2 - 1, half, dtype=jnp.float32)
    window = 0.54 - 0.46 * jnp.cos(2.0 * math.pi * n_lin / kernel_size)

    n = (kernel_size - 1) / 2.0
    n_ = 2.0 * math.pi * jnp.arange(-n, 0.0, dtype=jnp.float32) / sample_rate

    f_times_t_high = band_hz * n_
    band_pass_left = jnp.sin(f_times_t_high) / (n_ / 2.0) * window
    band_pass_center = jnp.array([2.0 * band_hz], dtype=jnp.float32)
    band_pass_right = band_pass_left[::-1]
    band_pass = jnp.concatenate([band_pass_left, band_pass_center, band_pass_right])
    return (band_pass / (2.0 * band_hz)).astype(jnp.float32)


def _build_band(filt: jnp.ndarray, eff_k: int, dilation: int,
                n_sub: int, halo: int, dtype) -> jnp.ndarray:
    """Resident block-banded weight: W[i, j] = w_dil[i - j] for 0<=i-j<eff_k."""
    w_dil = jnp.zeros((eff_k,), jnp.float32).at[::dilation].set(filt)
    i = jnp.arange(n_sub + halo, dtype=jnp.int32)[:, None]
    j = jnp.arange(n_sub, dtype=jnp.int32)[None, :]
    d = i - j
    valid = (d >= 0) & (d < eff_k)
    band = jnp.where(valid, w_dil[jnp.clip(d, 0, eff_k - 1)], 0.0)
    return band.astype(dtype)


# ----------------------------------------------------------------------------
# Pallas kernels
# ----------------------------------------------------------------------------
def _sinc_tap_kernel(f_ref, x_ref, xh_ref, o_ref, *, kernel_size, dilation, t_lane):
    """VPU tap-accumulation FIR for small effective kernels (no MXU).

    f_ref : (kernel_size,)   filter taps in SMEM (scalar reads)
    x_ref : (batch, t_lane)  main input block
    xh_ref: (batch, halo)    look-ahead halo (first lanes of the next block)
    o_ref : (batch, t_lane)  output block
    """
    win = jnp.concatenate([x_ref[...], xh_ref[...]], axis=1)      # (b, T+H)
    acc = f_ref[0] * win[:, 0:t_lane]
    for k in range(1, kernel_size):                               # static unroll
        off = k * dilation
        acc = acc + f_ref[k] * win[:, off:off + t_lane]
    o_ref[...] = acc.astype(o_ref.dtype)


def _sinc_banded_kernel(w_ref, x_ref, xh_ref, o_ref, *, n_sub, t_lane, halo):
    """Block-banded MXU FIR: one (b, n_sub+halo) @ (n_sub+halo, n_sub) bf16
    matmul (f32 accumulation) per 128/256-wide output sub-column.

    w_ref : (n_sub + halo, n_sub) bf16, resident across the grid
    x_ref : (batch, t_lane)       main input block
    xh_ref: (batch, halo)         look-ahead halo
    o_ref : (batch, t_lane)       output block
    """
    win = jnp.concatenate([x_ref[...], xh_ref[...]], axis=1).astype(jnp.bfloat16)
    w = w_ref[...]
    for s in range(t_lane // n_sub):                              # static unroll
        lo = s * n_sub
        lhs = win[:, lo:lo + n_sub + halo]                        # aligned slice
        out = jnp.dot(lhs, w, preferred_element_type=jnp.float32)
        o_ref[:, lo:lo + n_sub] = out.astype(o_ref.dtype)


# ----------------------------------------------------------------------------
# pallas_call wrapper for the "bulk" (all blocks fully in-bounds)
# ----------------------------------------------------------------------------
def _fir_bulk_call(x_k, filt, kernel_size, eff_k, dilation, nc_k, t_lane, halo):
    batch = x_k.shape[0]
    halo_stride = t_lane // halo

    if eff_k <= _TAP_MAX_EFF_K:
        kernel = functools.partial(_sinc_tap_kernel, kernel_size=kernel_size,
                                   dilation=dilation, t_lane=t_lane)
        w_arg = filt
        w_spec = pl.BlockSpec(memory_space=pltpu.MemorySpace.SMEM)
        w_bytes = 4 * int(filt.shape[0])
    else:
        n_sub = 256 if (t_lane % 256 == 0) else 128
        w_arg = _build_band(filt, eff_k, dilation, n_sub, halo, jnp.bfloat16)
        kernel = functools.partial(_sinc_banded_kernel, n_sub=n_sub,
                                   t_lane=t_lane, halo=halo)
        w_spec = pl.BlockSpec((n_sub + halo, n_sub), lambda c: (0, 0))
        w_bytes = 2 * (n_sub + halo) * n_sub

    blk_bytes = 4 * batch * t_lane
    halo_bytes = 4 * batch * halo
    # resident band + double-buffered in/halo/out blocks + in-kernel temps
    vmem_est = (w_bytes + 2 * (blk_bytes + halo_bytes) + 2 * blk_bytes
                + 6 * batch * (t_lane + halo) * 4)
    vmem_limit = int(min(48 << 20, max(16 << 20, 2 * vmem_est)))

    return pl.pallas_call(
        kernel,
        out_shape=jax.ShapeDtypeStruct((batch, nc_k * t_lane), x_k.dtype),
        grid_spec=pltpu.PrefetchScalarGridSpec(
            num_scalar_prefetch=0,
            grid=(nc_k,),
            in_specs=[
                w_spec,
                # main block: t_lane aligned lanes of the waveform
                pl.BlockSpec((batch, t_lane), lambda c: (0, c)),
                # halo: first `halo` lanes of the chunk right after this block
                pl.BlockSpec((batch, halo),
                             lambda c: (0, (c + 1) * halo_stride)),
            ],
            out_specs=pl.BlockSpec((batch, t_lane), lambda c: (0, c)),
        ),
        compiler_params=pltpu.CompilerParams(
            dimension_semantics=("parallel",),
            vmem_limit_bytes=vmem_limit,
        ),
    )(w_arg, x_k, x_k)


# ----------------------------------------------------------------------------
# Full FIR: bulk via Pallas (zero-copy when possible) + tiny JAX tail
# ----------------------------------------------------------------------------
def _fir_pallas(x2d, filt, kernel_size, eff_k, dilation, n_out,
                t_target=1024, chunk_target=8):
    batch, n_in = x2d.shape

    # Look-ahead halo, rounded to a lane multiple (>= eff_k - 1, >= 128).
    halo = 128 * max(1, pl.cdiv(max(eff_k - 1, 1), 128))
    # Time tile: multiple of halo, capped at ~t_target lanes, shrunk so the
    # grid has several steps (feeds both v7x TensorCores / pipelining).
    t_mult_max = max(1, t_target // halo)
    t_mult_fit = max(1, pl.cdiv(n_out, chunk_target * halo))
    t_lane = halo * min(t_mult_max, t_mult_fit)

    nc_full = pl.cdiv(n_out, t_lane)
    nc_inb = max(0, (n_in - halo) // t_lane)    # chunks readable with no padding

    if nc_inb >= nc_full:
        x_k, nc_k = x2d, nc_full                # zero-copy: everything in-kernel
    elif nc_inb >= 1:
        x_k, nc_k = x2d, nc_inb                 # zero-copy bulk; JAX ragged tail
    else:
        # Whole clip shorter than one tile: tiny pad so the kernel still runs.
        lanes = nc_full * t_lane + halo
        x_k = jnp.zeros((batch, lanes), x2d.dtype).at[:, :n_in].set(x2d)
        nc_k = nc_full

    bulk = _fir_bulk_call(x_k, filt, kernel_size, eff_k, dilation,
                          nc_k, t_lane, halo)

    n_bulk = min(n_out, nc_k * t_lane)
    out = bulk[:, :n_bulk]

    if n_bulk < n_out:
        # Ragged tail (< t_lane + halo outputs) in plain JAX — avoids a full
        # padded copy of the waveform in front of the kernel.
        xt = x2d[:, n_bulk:]
        tail = jax.lax.conv_general_dilated(
            xt[:, None, :], filt[None, None, :],
            window_strides=(1,), padding="VALID",
            rhs_dilation=(dilation,),
            dimension_numbers=("NCH", "OIH", "NCH"),
            precision=jax.lax.Precision.HIGHEST)[:, 0, :]
        out = jnp.concatenate([out, tail], axis=1)
    return out


# ----------------------------------------------------------------------------
# Module forward: SincConv_lowpass
# ----------------------------------------------------------------------------
def sinc_conv_lowpass(waveforms: jnp.ndarray,
                      kernel_size: int,
                      sample_rate: int = 16000,
                      stride: int = 1,
                      padding: int = 0,
                      dilation: int = 1,
                      band_hz: float | None = None) -> jnp.ndarray:
    """waveforms: (batch, 1, n_samples) f32 -> (batch, 1, n_samples_out) f32."""
    if kernel_size % 2 == 0:
        kernel_size = kernel_size + 1
    if band_hz is None:
        band_hz = float(sample_rate // 2)       # nn.Parameter band_hz_ init value

    filt = _make_sinc_lowpass_filter(kernel_size, sample_rate, float(band_hz))

    batch, in_ch, n_samples = waveforms.shape
    assert in_ch == 1, "SincConv only supports one input channel"
    x2d = waveforms.reshape(batch, n_samples)

    if padding > 0:
        x2d = jnp.pad(x2d, ((0, 0), (padding, padding)))
        n_samples = n_samples + 2 * padding

    eff_k = dilation * (kernel_size - 1) + 1
    n_out = n_samples - eff_k + 1
    assert n_out > 0, "input too short for the requested filter"

    out2d = _fir_pallas(x2d, filt, kernel_size, eff_k, dilation, n_out)

    if stride > 1:
        out2d = out2d[:, ::stride]      # TODO(synk): fold stride into the band
    return out2d[:, None, :]


# ----------------------------------------------------------------------------
# NumPy reference (float64, independent correlate)
# ----------------------------------------------------------------------------
def _np_fir_reference(waveforms, kernel_size, sample_rate, band_hz,
                      stride=1, padding=0, dilation=1):
    k_odd = kernel_size + 1 if kernel_size % 2 == 0 else kernel_size
    filt = np.asarray(_make_sinc_lowpass_filter(k_odd, sample_rate, float(band_hz)),
                      dtype=np.float64)
    eff_k = dilation * (k_odd - 1) + 1
    w = np.zeros(eff_k, np.float64)
    w[::dilation] = filt
    x = np.asarray(waveforms[:, 0, :], dtype=np.float64)
    if padding > 0:
        x = np.pad(x, ((0, 0), (padding, padding)))
    out = np.stack([np.correlate(x[b], w, mode="valid") for b in range(x.shape[0])])
    return out[:, ::stride][:, None, :]


# ----------------------------------------------------------------------------
# Demo + correctness checks (one per kernel path)
# ----------------------------------------------------------------------------
if __name__ == "__main__":
    key = jax.random.PRNGKey(0)
    ka, kb = jax.random.split(key)

    # --- Config A: small kernel -> VPU tap-accumulation path (f32 exact) ----
    wav_a = jax.random.normal(ka, (2, 1, 2000), dtype=jnp.float32)
    out_a = sinc_conv_lowpass(wav_a, kernel_size=9, sample_rate=16000,
                              band_hz=3000.0)
    out_a = jax.block_until_ready(out_a)

    ref_a = _np_fir_reference(np.asarray(wav_a), 9, 16000, 3000.0)
    assert out_a.shape == ref_a.shape == (2, 1, 1992), out_a.shape
    err_a = float(np.max(np.abs(np.asarray(out_a, np.float64) - ref_a)))
    assert err_a < 1e-4, f"tap path max abs error {err_a}"

    # --- Config B: long filter + 'same' padding (SamplingRateSinc-style) ----
    # -> block-banded bf16 MXU path with f32 accumulation.
    wav_b = jax.random.normal(kb, (2, 1, 2048), dtype=jnp.float32)
    out_b = sinc_conv_lowpass(wav_b, kernel_size=251, sample_rate=16000,
                              padding=125, band_hz=2000.0)
    out_b = jax.block_until_ready(out_b)

    ref_b = _np_fir_reference(np.asarray(wav_b), 251, 16000, 2000.0, padding=125)
    assert out_b.shape == ref_b.shape == (2, 1, 2048), out_b.shape
    err_b = float(np.max(np.abs(np.asarray(out_b, np.float64) - ref_b)))
    rel_b = err_b / max(1e-6, float(np.max(np.abs(ref_b))))
    # bf16 LHS/weights with f32 accumulation: ~1e-3..1e-2 relative error.
    assert rel_b < 3e-2, f"banded bf16 path rel error {rel_b} (abs {err_b})"

    print("KERNEL_OK")
</pallas_src>

<mosaic_0001>
module attributes {stable_mosaic.version = 11 : i64} {
  func.func @_sinc_tap_kernel(%arg0: i32, %arg1: memref<9xf32, #tpu.memory_space<smem>>, %arg2: memref<2x256xf32, #tpu.memory_space<vmem>>, %arg3: memref<2x128xf32, #tpu.memory_space<vmem>>, %arg4: memref<2x256xf32, #tpu.memory_space<vmem>>) attributes {dimension_semantics = [#tpu.dimension_semantics<parallel>], iteration_bounds = array<i64: 7>, scalar_prefetch = 0 : i64, scratch_operands = 0 : i64, tpu.core_type = #tpu.core_type<tc>, window_params = [{transform_indices = @transform_0, window_bounds = array<i64: 9>}, {transform_indices = @transform_1, window_bounds = array<i64: 2, 256>}, {transform_indices = @transform_2, window_bounds = array<i64: 2, 128>}, {transform_indices = @transform_3, window_bounds = array<i64: 2, 256>}]} {
    %c0 = arith.constant 0 : index
    %c0_0 = arith.constant 0 : index
    %0 = vector.load %arg2[%c0, %c0_0] : memref<2x256xf32, #tpu.memory_space<vmem>>, vector<2x256xf32>
    %c0_1 = arith.constant 0 : index
    %c0_2 = arith.constant 0 : index
    %1 = vector.load %arg3[%c0_1, %c0_2] : memref<2x128xf32, #tpu.memory_space<vmem>>, vector<2x128xf32>
    %2 = tpu.concatenate %0, %1 in 1 : vector<2x256xf32>, vector<2x128xf32> -> vector<2x384xf32>
    %c0_3 = arith.constant 0 : index
    %3 = memref.load %arg1[%c0_3] : memref<9xf32, #tpu.memory_space<smem>>
    %4 = vector.extract_strided_slice %2 {offsets = [0, 0], sizes = [2, 256], strides = [1, 1]} : vector<2x384xf32> to vector<2x256xf32>
    %5 = vector.broadcast %3 : f32 to vector<2x256xf32>
    %6 = arith.mulf %5, %4 : vector<2x256xf32>
    %c1 = arith.constant 1 : index
    %7 = memref.load %arg1[%c1] : memref<9xf32, #tpu.memory_space<smem>>
    %8 = vector.extract_strided_slice %2 {offsets = [0, 1], sizes = [2, 256], strides = [1, 1]} : vector<2x384xf32> to vector<2x256xf32>
    %9 = vector.broadcast %7 : f32 to vector<2x256xf32>
    %10 = arith.mulf %9, %8 : vector<2x256xf32>
    %11 = arith.addf %6, %10 : vector<2x256xf32>
    %c2 = arith.constant 2 : index
    %12 = memref.load %arg1[%c2] : memref<9xf32, #tpu.memory_space<smem>>
    %13 = vector.extract_strided_slice %2 {offsets = [0, 2], sizes = [2, 256], strides = [1, 1]} : vector<2x384xf32> to vector<2x256xf32>
    %14 = vector.broadcast %12 : f32 to vector<2x256xf32>
    %15 = arith.mulf %14, %13 : vector<2x256xf32>
    %16 = arith.addf %11, %15 : vector<2x256xf32>
    %c3 = arith.constant 3 : index
    %17 = memref.load %arg1[%c3] : memref<9xf32, #tpu.memory_space<smem>>
    %18 = vector.extract_strided_slice %2 {offsets = [0, 3], sizes = [2, 256], strides = [1, 1]} : vector<2x384xf32> to vector<2x256xf32>
    %19 = vector.broadcast %17 : f32 to vector<2x256xf32>
    %20 = arith.mulf %19, %18 : vector<2x256xf32>
    %21 = arith.addf %16, %20 : vector<2x256xf32>
    %c4 = arith.constant 4 : index
    %22 = memref.load %arg1[%c4] : memref<9xf32, #tpu.memory_space<smem>>
    %23 = vector.extract_strided_slice %2 {offsets = [0, 4], sizes = [2, 256], strides = [1, 1]} : vector<2x384xf32> to vector<2x256xf32>
    %24 = vector.broadcast %22 : f32 to vector<2x256xf32>
    %25 = arith.mulf %24, %23 : vector<2x256xf32>
    %26 = arith.addf %21, %25 : vector<2x256xf32>
    %c5 = arith.constant 5 : index
    %27 = memref.load %arg1[%c5] : memref<9xf32, #tpu.memory_space<smem>>
    %28 = vector.extract_strided_slice %2 {offsets = [0, 5], sizes = [2, 256], strides = [1, 1]} : vector<2x384xf32> to vector<2x256xf32>
    %29 = vector.broadcast %27 : f32 to vector<2x256xf32>
    %30 = arith.mulf %29, %28 : vector<2x256xf32>
    %31 = arith.addf %26, %30 : vector<2x256xf32>
    %c6 = arith.constant 6 : index
    %32 = memref.load %arg1[%c6] : memref<9xf32, #tpu.memory_space<smem>>
    %33 = vector.extract_strided_slice %2 {offsets = [0, 6], sizes = [2, 256], strides = [1, 1]} : vector<2x384xf32> to vector<2x256xf32>
    %34 = vector.broadcast %32 : f32 to vector<2x256xf32>
    %35 = arith.mulf %34, %33 : vector<2x256xf32>
    %36 = arith.addf %31, %35 : vector<2x256xf32>
    %c7 = arith.constant 7 : index
    %37 = memref.load %arg1[%c7] : memref<9xf32, #tpu.memory_space<smem>>
    %38 = vector.extract_strided_slice %2 {offsets = [0, 7], sizes = [2, 256], strides = [1, 1]} : vector<2x384xf32> to vector<2x256xf32>
    %39 = vector.broadcast %37 : f32 to vector<2x256xf32>
    %40 = arith.mulf %39, %38 : vector<2x256xf32>
    %41 = arith.addf %36, %40 : vector<2x256xf32>
    %c8 = arith.constant 8 : index
    %42 = memref.load %arg1[%c8] : memref<9xf32, #tpu.memory_space<smem>>
    %43 = vector.extract_strided_slice %2 {offsets = [0, 8], sizes = [2, 256], strides = [1, 1]} : vector<2x384xf32> to vector<2x256xf32>
    %44 = vector.broadcast %42 : f32 to vector<2x256xf32>
    %45 = arith.mulf %44, %43 : vector<2x256xf32>
    %46 = arith.addf %41, %45 : vector<2x256xf32>
    %c0_4 = arith.constant 0 : index
    %c0_5 = arith.constant 0 : index
    %47 = vector.load %arg4[%c0_4, %c0_5] : memref<2x256xf32, #tpu.memory_space<vmem>>, vector<2x256xf32>
    tpu.vector_store %arg4[%c0_4, %c0_5], %46 {strides = array<i32>} : memref<2x256xf32, #tpu.memory_space<vmem>>, vector<2x256xf32>,
    return
  }
  func.func @transform_0(%arg0: i32) -> i32 {
    %c0_i32 = arith.constant 0 : i32
    %c0_i32_0 = arith.constant 0 : i32
    return %c0_i32 : i32
  }
  func.func @transform_1(%arg0: i32) -> (i32, i32) {
    %c0_i32 = arith.constant 0 : i32
    %c0_i32_0 = arith.constant 0 : i32
    return %c0_i32, %arg0 : i32, i32
  }
  func.func @transform_2(%arg0: i32) -> (i32, i32) {
    %c1_i32 = arith.constant 1 : i32
    %0 = arith.addi %arg0, %c1_i32 : i32
    %c2_i32 = arith.constant 2 : i32
    %1 = arith.muli %0, %c2_i32 : i32
    %c0_i32 = arith.constant 0 : i32
    %c0_i32_0 = arith.constant 0 : i32
    return %c0_i32, %1 : i32, i32
  }
  func.func @transform_3(%arg0: i32) -> (i32, i32) {
    %c0_i32 = arith.constant 0 : i32
    %c0_i32_0 = arith.constant 0 : i32
    return %c0_i32, %arg0 : i32, i32
  }
}

</mosaic_0001>

<bundles_post_ra>
// kernel: tpu_custom_call.1
= control target key start
LH: loop header
LB: loop body
LE: loop exit
PB: predicated region body
PF: predicated region fallthrough
CT: control target
= control target key end

     0   :  { %s1143_s0 = inlined_call_operand.hbm [shape: f32[9], index: 0, kind: input, shape index: {}]   ;;  %s1144_s1 = inlined_call_operand.hbm [shape: f32[2,2000], index: 1, kind: input, shape index: {}]   ;;  %s1145_s2 = inlined_call_operand.hbm [shape: f32[2,2000], index: 2, kind: input, shape index: {}]   ;;  %s1146_s3 = inlined_call_operand.hbm [shape: f32[2,1792], index: 3, kind: output, shape index: {}]  }
   0x1   :  { %1150 = sst [smem:[#allocation14_spill]] %s1143_s0 }
   0x2   :  { %8 = vsyncpa [#allocation5], 0 }
   0x3   :  { %9 = vsyncpa [#allocation3], 0 }
   0x4   :  { %11 = vsyncpa [#allocation3 + $0x1], 0 }
   0x5   :  { %12 = vsyncpa [#allocation8], 0 }
   0x6   :  { %14 = vsyncpa [#allocation8 + $0x1], 0 }
   0x7   :  { %15 = vsyncpa [#allocation4], 0 }
   0x8   :  { %17 = vsyncpa [#allocation4 + $0x1], 0  ;;  %s897_s12 = smov 0   ;;  %s899_s13 = smov 0  }
   0x9   :  { %s901_s14 = smov 0   ;;  %s903_s15 = smov 0  }
   0xa   :  { %s905_s16 = smov 0   ;;  %s907_s17 = smov 0  }
   0xb   :  { %s909_s18 = smov 0  }
   0xc LB: > { %s1151_s0 = sld [smem:[#allocation14_spill]]  ;;  %s936_s22 = sadd.s32 4294967295, %s866_s18   ;;  %s866_s18 = sphi %s909_s18, %s1169_s18   ;;  %s862_s17 = sphi %s907_s17, %s1168_s17   ;;  %s858_s16 = sphi %s905_s16, %s1167_s16   ;;  %s854_s15 = sphi %s903_s15, %s1166_s15   ;;  %s850_s14 = sphi %s901_s14, %s1165_s14   ;;  %s846_s13 = sphi %s899_s13, %s1164_s13   ;;  %s842_s12 = sphi %s897_s12, %s1163_s12  }
   0xd   : > { %p565_p0 = scmp.ge.s32.totalorder %s866_s18, 1  ;;  %p1149_p1 = scmp.eq.s32.totalorder %s936_s22, 0 }
   0xe   : > { %p118_p2 = scmp.eq.s32.totalorder %s936_s22, 6  ;;  %p131_p3 = scmp.lt.s32.totalorder %s866_s18, 8 }
   0xf   : > { %s562_s24 = sadd.s32 4294967294, %s866_s18   ;;  %s952_s25 = sadd.s32 1, %s866_s18  }
  0x10   : > { %p942_p4 = pnand %p565_p0, %p131_p3  ;;  %s51_s26 = sadd.s32 1, %s862_s17 }
  0x11   : > { %s48_s27 = ssub.s32 %s866_s18, %s952_s25  ;;  %s868_s28 = smov [#allocation2]  }
  0x12   : > { %s143_s21 = sshll.u32 %s1151_s0, 4  ;;  %p609_p5 = pneg %p942_p4  ;;  %s144_s21 = int_to_ptr.hbm [resolvable:$true] %s143_s21 }
  0x13   : > { %p49_p7 = scmp.eq.s32.totalorder %s48_s27, 0  ;;  %p58_p8 = scmp.ne.s32.totalorder %s862_s17, %s858_s16 }
  0x14   : > { %p610_p6 = pnand %p609_p5, %p1149_p1  ;;  %p1148_p9 = scmp.eq.s32.totalorder %s866_s18, 0 }
  0x15   : > { %p64_p10 = scmp.ne.s32.totalorder %s858_s16, %s854_s15  ;;  %p973_p12 = por %p118_p2, %p58_p8 }
  0x16   : > { %612 = dma.hbm_to_smem (!%p610_p6), %s144_s21, 16, %s868_s28, [#allocation5]  }
  0x17   : > { %s963_s29 = scalar_select %p49_p7, %s862_s17, %s51_s26  }
  0x18   : > { %p967_p11 = por %p1149_p1, %p64_p10  ;;  %p124_p13 = scmp.eq.s32.totalorder %s562_s24, 6 }
  0x19   : > { %p60_p0 = por %p1148_p9, %p58_p8  ;;  %s154_s5 = sand.u32 1, %s862_s17  }
  0x1a   : > { %p980_p3 = por %p124_p13, %p64_p10  ;;  %p1147_p5 = scmp.lt.s32.totalorder %s866_s18, 7 }
  0x1b   : > { %s568_s7 = sshll.u32 %s154_s5, 2  ;;  %s595_s8 = sshll.u32 %s866_s18, 2 }
  0x1c   : > { %s163_s11 = scalar_lea.hbm %s1144_s1, %s595_s8  ;;  %s158_s20 = scalar_lea.vmem [#allocation6], %s568_s7 }
  0x1d   : > { %s165_s19 = sshll.u32 %s163_s11, 4  ;;  %s167_s21 = sshll.u32 %s158_s20, 4  ;;  %s166_s19 = int_to_ptr.hbm [resolvable:$true] %s165_s19  ;;  %s168_s21 = int_to_ptr.vmem [resolvable:$true] %s167_s21 }
  0x1e   : > { %p993_p2 = pnand %p1147_p5, %p60_p0  ;;  %s155_s26 = scalar_lea.sflag [#allocation3], %s154_s5 }
  0x1f   : > { %s708_s27 = sshra.s32 %s166_s19, 4  ;;  %s715_s10 = scalar_lea.hbm %s1144_s1, 32  ;;  %s709_s27 = int_to_ptr.hbm [resolvable:$true] %s708_s27 }
  0x20   : > { %s710_s28 = scalar_lea.hbm %s709_s27, 4  ;;  %p712_p7 = pneg %p993_p2 }
  0x21   : > { %p711_p6 = scmp.ne.s32.totalorder %s709_s27, %s710_s28  ;;  %p716_p13 = scmp.lt.s32.totalorder %s709_s27, %s1144_s1 }
  0x22   : > { %p717_p0 = scmp.lt.s32.totalorder %s715_s10, %s710_s28 }
  0x23   : > { %p713_p8 = pnand %p712_p7, %p711_p6 }
  0x24   : > { %p718_p5 = por %p717_p0, %p716_p13 }
  0x25   : > { %p714_p10 = pneg %p713_p8 }
  0x27   : > { %p719_p9 = pnand %p718_p5, %p714_p10 }
  0x29   : > { %722 = shalt.err (!%p719_p9)
}
  0x2a   : > { %616 = dma.hbm_to_vmem [thread:$0]  (!%p993_p2), %s166_s19, 64, %s168_s21, %s155_s26  }
  0x2b   : > { %s591_s5 = sshll.u32 %s866_s18, 1  ;;  %s81_s28 = sadd.s32 1, %s850_s14 }
  0x2c   : > { %s592_s27 = sadd.s32 2, %s591_s5  ;;  %p94_p5 = scmp.ne.s32.totalorder %s846_s13, %s842_s12 }
  0x2d   : > { %s594_s9 = sadd.s32 2, %s592_s27  ;;  %p88_p9 = scmp.ne.s32.totalorder %s850_s14, %s846_s13 }
  0x2e   : > { %s78_s7 = ssub.s32 %s592_s27, %s594_s9  ;;  %p1015_p7 = por %p94_p5, %p1149_p1 }
  0x2f   : > { %p79_p6 = scmp.eq.s32.totalorder %s78_s7, 0  ;;  %s174_s10 = sand.u32 1, %s850_s14  }
  0x30   : > { %s495_s19 = scalar_lea.hbm %s1145_s2, %s595_s8  ;;  %p1158_p2 = scmp.eq.s32.totalorder %s866_s18, 0 }
  0x31   : > { %s1026_s21 = scalar_select %p79_p6, %s850_s14, %s81_s28  }
  0x32   : > { %p90_p8 = por %p88_p9, %p1158_p2  ;;  %s571_s12 = sshll.u32 %s174_s10, 1 }
  0x33   : > { %s496_s26 = scalar_lea.hbm %s495_s19, 4  ;;  %s178_s27 = scalar_lea.vmem [#allocation7], %s571_s12 }
  0x34   : > { %s186_s5 = sshll.u32 %s496_s26, 4  ;;  %s188_s9 = sshll.u32 %s178_s27, 4  ;;  %s187_s5 = int_to_ptr.hbm [resolvable:$true] %s186_s5  ;;  %s189_s9 = int_to_ptr.vmem [resolvable:$true] %s188_s9 }
  0x35   : > { %p1159_p10 = scmp.lt.s32.totalorder %s866_s18, 7  ;;  %s175_s0 = scalar_lea.sflag [#allocation8], %s174_s10 }
  0x36   : > { %s738_s11 = sshra.s32 %s187_s5, 4  ;;  %s745_s19 = scalar_lea.hbm %s1145_s2, 32  ;;  %s739_s11 = int_to_ptr.hbm [resolvable:$true] %s738_s11 }
  0x37   : > { %p1032_p13 = pnand %p1159_p10, %p90_p8  ;;  %s740_s8 = scalar_lea.hbm %s739_s11, 2 }
  0x38   : > { %p741_p0 = scmp.ne.s32.totalorder %s739_s11, %s740_s8  ;;  %p746_p2 = scmp.lt.s32.totalorder %s739_s11, %s1145_s2 }
  0x39   : > { %p742_p5 = pneg %p1032_p13  ;;  %p747_p8 = scmp.lt.s32.totalorder %s745_s19, %s740_s8 }
  0x3b   : > { %p743_p9 = pnand %p742_p5, %p741_p0  ;;  %p748_p10 = por %p747_p8, %p746_p2 }
  0x3d   : > { %p744_p6 = pneg %p743_p9 }
  0x3f   : > { %p749_p1 = pnand %p748_p10, %p744_p6 }
  0x41   : > { %752 = shalt.err (!%p749_p1)
}
  0x42   : > { %619 = dma.hbm_to_vmem [thread:$0]  (!%p1032_p13), %s187_s5, 32, %s189_s9, %s175_s0  }
  0x43   : > { %197 = sbr.rel (%p942_p4) target bundleno = 274 (0x112), region = 32  ;;  %p1161_p0 = scmp.eq.s32.totalorder (!%p942_p4), %s936_s22, 0 }
  0x48   : > { %825 = dma.done.wait (%p1161_p0), [#allocation5], 16   ;;  %p1162_p5 = pmov %p1161_p0 }
  0x49   : > { %s1053_s10 = sand.u32 1, %s858_s16  }
  0x4a   : > { %827 = vsyncadd (%p1162_p5), [#allocation5], 4294967280  ;;  %s575_s27 = sshll.u32 %s1053_s10, 2  ;;  %s205_s11 = scalar_lea.sflag [#allocation3], %s1053_s10 }
  0x4b   : > { %s208_s0 = scalar_lea.vmem [#allocation6], %s575_s27 }
  0x4c   : > { %829 = dma.done.wait (%p967_p11), %s205_s11, 64  }
  0x4d   : > { %831 = vsyncadd (%p967_p11), %s205_s11, 4294967232  ;;  %s214_s23 = sand.u32 1, %s846_s13  }
  0x4e   : > { %s576_s5 = sshll.u32 %s214_s23, 1  ;;  %s215_s9 = scalar_lea.sflag [#allocation8], %s214_s23 }
  0x4f   : > { %s218_s7 = scalar_lea.vmem [#allocation7], %s576_s5 }
  0x50   : > { %833 = dma.done.wait (%p1015_p7), %s215_s9, 32  }
  0x51   : > { %835 = vsyncadd (%p1015_p7), %s215_s9, 4294967264 }
  0x52   : > { %224 = sfence }
  0x53   : > { %s578_s8 = sld [smem:[#allocation2 + $0x1]]  ;;  %v252_v0 = vld [vmem:[%s208_s0] sm:$0xf]  ;;  %v1068_v1 = vld [vmem:[%s218_s7] sm:$0x3]  ;;  %s869_s30 = smov 127  }
  0x54   : > { %s579_s28 = sld [smem:[#allocation2 + $0x2]]  ;;  %255 = vst [vmem:[#allocation1] ss:$4 sm:$0xff] %v252_v0  ;;  %s870_s20 = smov 126   ;;  %vm278_vm0 = vcmask 1039360   ;;  %vm299_vm1 = vcmask 1031168  }
  0x55   : > { %s580_s24 = sld [smem:[#allocation2 + $0x3]]  ;;  %s871_s12 = smov 125   ;;  %vm320_vm2 = vcmask 1022976   ;;  %vm341_vm3 = vcmask 1014784   ;;  %vm362_vm4 = vcmask 1006592   ;;  %vm383_vm5 = vcmask 998400  }
  0x56   : > { %s581_s19 = sld [smem:[#allocation2 + $0x4]]  ;;  %s872_s11 = smov 124   ;;  %vm404_vm6 = vcmask 990208   ;;  %vm425_vm7 = vcmask 982016   ;;  %vm435_vm8 = vcmask 1041408  }
  0x57   : > { %s582_s26 = sld [smem:[#allocation2 + $0x5]]  ;;  %s873_s23 = smov 123  }
  0x58   : > { %s583_s0 = sld [smem:[#allocation2 + $0x6]]  ;;  %s874_s9 = smov 122  }
  0x59   : > { %v265_v2 = vstv %s578_s8  ;;  %s584_s5 = sld [smem:[#allocation2 + $0x7]]  ;;  %s875_s8 = smov 121  }
  0x5a   : > { %v268_v3 = vmul.f32 %v265_v2, %v1068_v1  ;;  %v286_v4 = vstv %s579_s28  ;;  %s585_s7 = sld [smem:[#allocation2 + $0x8]]  ;;  %s876_s28 = smov 120  }
  0x5b   : > { %v289_v5 = vmul.f32 %v286_v4, %v1068_v1  ;;  %v1072_v6 = vld.sshfl [vmem:[#allocation1] sm:$0xff pattern:$0x73625140]  ;;  %v1076_v9 = vld.sshfl [vmem:[#allocation1 + $0x8] sm:$0xff pattern:$0x73625140]  ;;  %v307_v12 = vstv %s580_s24 }
  0x5c   : > { %276 = vrot.lane.b32.xlu1 %v268_v3, %s869_s30  ;;  %v266_v7 = vmul.f32 %v265_v2, %v1072_v6  ;;  %v287_v8 = vmul.f32 %v286_v4, %v1072_v6  ;;  %v288_v10 = vmul.f32 %v286_v4, %v1076_v9  ;;  %v267_v11 = vmul.f32 %v265_v2, %v1076_v9  ;;  %s596_s24 = sshll.u32 %s936_s22, 2  ;;  %s247_s22 = scalar_lea.vmem [#allocation9], %s575_s27 }
  0x5d   : > { %297 = vrot.lane.b32.xlu2 %v289_v5, %s870_s20  ;;  %v310_v13 = vmul.f32 %v307_v12, %v1068_v1  ;;  %v308_v14 = vmul.f32 %v307_v12, %v1072_v6  ;;  %v309_v15 = vmul.f32 %v307_v12, %v1076_v9  ;;  %v328_v16 = vstv %s581_s19  ;;  %s788_s27 = scalar_lea.hbm %s1146_s3, 28 }
  0x5e   : > { %272 = vrot.lane.b32.xlu0 %v266_v7, %s869_s30  ;;  %v331_v17 = vmul.f32 %v328_v16, %v1068_v1  ;;  %v329_v18 = vmul.f32 %v328_v16, %v1072_v6  ;;  %v330_v19 = vmul.f32 %v328_v16, %v1076_v9  ;;  %v349_v20 = vstv %s582_s26  ;;  %s453_s26 = sshll.u32 %s247_s22, 4  ;;  %s454_s26 = int_to_ptr.vmem [resolvable:$true] %s453_s26 }
  0x5f   : > { %v352_v21 = vmul.f32 %v349_v20, %v1068_v1  ;;  %v350_v22 = vmul.f32 %v349_v20, %v1072_v6  ;;  %v351_v23 = vmul.f32 %v349_v20, %v1076_v9  ;;  %v370_v24 = vstv %s583_s0  ;;  %s440_s0 = scalar_lea.sflag [#allocation4], %s1053_s10 }
  0x60   : > { %v373_v25 = vmul.f32 %v370_v24, %v1068_v1  ;;  %v371_v26 = vmul.f32 %v370_v24, %v1072_v6  ;;  %v372_v27 = vmul.f32 %v370_v24, %v1076_v9  ;;  %v391_v28 = vstv %s584_s5 }
  0x61   : > { %v394_v29 = vmul.f32 %v391_v28, %v1068_v1  ;;  %v392_v30 = vmul.f32 %v391_v28, %v1072_v6  ;;  %v393_v31 = vmul.f32 %v391_v28, %v1076_v9  ;;  %v412_v32 = vstv %s585_s7 }
  0x62   : > { %v415_v33 = vmul.f32 %v412_v32, %v1068_v1  ;;  %v413_v34 = vmul.f32 %v412_v32, %v1072_v6  ;;  %v414_v35 = vmul.f32 %v412_v32, %v1076_v9 }
  0x64   : > { %293 = vrot.lane.b32.xlu1 %v287_v8, %s870_s20 }
  0x65   : > { %295 = vrot.lane.b32.xlu2 %v288_v10, %s870_s20 }
  0x66   : > { %274 = vrot.lane.b32.xlu0 %v267_v11, %s869_s30  ;;  %s260_s30 = sld [smem:[#allocation2]] }
  0x6c   : > { %318 = vrot.lane.b32.xlu1 %v310_v13, %s871_s12  ;;  %v261_v52 = vstv %s260_s30 }
  0x6d   : > { %314 = vrot.lane.b32.xlu2 %v308_v14, %s871_s12  ;;  %v263_v54 = vmul.f32 %v261_v52, %v1076_v9  ;;  %v262_v56 = vmul.f32 %v261_v52, %v1072_v6 }
  0x6e   : > { %316 = vrot.lane.b32.xlu0 %v309_v15, %s871_s12  ;;  %s451_s12 = scalar_lea.hbm %s1146_s3, %s596_s24 }
  0x74   : > { %339 = vrot.lane.b32.xlu1 %v331_v17, %s872_s11 }
  0x75   : > { %335 = vrot.lane.b32.xlu2 %v329_v18, %s872_s11 }
  0x76   : > { %337 = vrot.lane.b32.xlu0 %v330_v19, %s872_s11  ;;  %s455_s11 = sshll.u32 %s451_s12, 4  ;;  %s456_s11 = int_to_ptr.hbm [resolvable:$true] %s455_s11 }
  0x7c   : > { %360 = vrot.lane.b32.xlu1 %v352_v21, %s873_s23 }
  0x7d   : > { %356 = vrot.lane.b32.xlu2 %v350_v22, %s873_s23 }
  0x7e   : > { %358 = vrot.lane.b32.xlu0 %v351_v23, %s873_s23  ;;  %s782_s23 = sshra.s32 %s456_s11, 4  ;;  %s783_s23 = int_to_ptr.hbm [resolvable:$true] %s782_s23 }
  0x7f   : > { %s784_s5 = scalar_lea.hbm %s783_s23, 4  ;;  %p789_p7 = scmp.lt.s32.totalorder %s783_s23, %s1146_s3 }
  0x80   : > { %p785_p1 = scmp.ne.s32.totalorder %s783_s23, %s784_s5  ;;  %p790_p13 = scmp.lt.s32.totalorder %s788_s27, %s784_s5 }
  0x82   : > { %p786_p4 = pnand %p785_p1, %p973_p12  ;;  %p791_p9 = por %p790_p13, %p789_p7 }
  0x84   : > { %381 = vrot.lane.b32.xlu1 %v373_v25, %s874_s9  ;;  %p787_p11 = pneg %p786_p4 }
  0x85   : > { %377 = vrot.lane.b32.xlu2 %v371_v26, %s874_s9 }
  0x86   : > { %379 = vrot.lane.b32.xlu0 %v372_v27, %s874_s9  ;;  %p792_p6 = pnand %p791_p9, %p787_p11 }
  0x8c   : > { %402 = vrot.lane.b32.xlu1 %v394_v29, %s875_s8 }
  0x8d   : > { %398 = vrot.lane.b32.xlu2 %v392_v30, %s875_s8 }
  0x8e   : > { %400 = vrot.lane.b32.xlu0 %v393_v31, %s875_s8 }
  0x94   : > { %423 = vrot.lane.b32.xlu1 %v415_v33, %s876_s28 }
  0x95   : > { %419 = vrot.lane.b32.xlu2 %v413_v34, %s876_s28 }
  0x96   : > { %421 = vrot.lane.b32.xlu0 %v414_v35, %s876_s28 }
  0xb7   : > { %v298_v36 = vpop.permute.xlu2 %297 }
  0xbf   : > { %v296_v37 = vpop.permute.xlu2 %295 }
  0xc0   : > { %v301_v62 = vsel %vm299_vm1, %v296_v37, %v298_v36 }
  0xc7   : > { %v315_v40 = vpop.permute.xlu2 %314 }
  0xce   : > { %v277_v38 = vpop.permute.xlu1 %276 }
  0xcf   : > { %v336_v44 = vpop.permute.xlu2 %335 }
  0xd0   : > { %v273_v39 = vpop.permute.xlu0 %272 }
  0xd6   : > { %v294_v41 = vpop.permute.xlu1 %293 }
  0xd7   : > { %v357_v48 = vpop.permute.xlu2 %356  ;;  %v300_v2 = vsel %vm299_vm1, %v294_v41, %v296_v37 }
  0xd8   : > { %v275_v42 = vpop.permute.xlu0 %274 }
  0xd9   : > { %v280_v55 = vsel %vm278_vm0, %v275_v42, %v277_v38  ;;  %v279_v58 = vsel %vm278_vm0, %v273_v39, %v275_v42 }
  0xda   : > { %v284_v59 = vadd.f32 %v280_v55, %v263_v54  ;;  %v283_v60 = vadd.f32 %v279_v58, %v262_v56 }
  0xdc   : > { %v305_v1 = vadd.f32 %v301_v62, %v284_v59  ;;  %v304_v5 = vadd.f32 %v300_v2, %v283_v60 }
  0xde   : > { %v319_v43 = vpop.permute.xlu1 %318 }
  0xdf   : > { %v378_v51 = vpop.permute.xlu2 %377 }
  0xe0   : > { %v317_v45 = vpop.permute.xlu0 %316 }
  0xe1   : > { %v322_v63 = vsel %vm320_vm2, %v317_v45, %v319_v43  ;;  %v321_v3 = vsel %vm320_vm2, %v315_v40, %v317_v45 }
  0xe2   : > { %v326_v7 = vadd.f32 %v322_v63, %v305_v1  ;;  %v325_v10 = vadd.f32 %v321_v3, %v304_v5 }
  0xe6   : > { %v340_v46 = vpop.permute.xlu1 %339 }
  0xe7   : > { %v399_v61 = vpop.permute.xlu2 %398 }
  0xe8   : > { %v338_v47 = vpop.permute.xlu0 %337 }
  0xe9   : > { %v343_v4 = vsel %vm341_vm3, %v338_v47, %v340_v46  ;;  %v342_v8 = vsel %vm341_vm3, %v336_v44, %v338_v47 }
  0xea   : > { %v347_v11 = vadd.f32 %v343_v4, %v326_v7  ;;  %v346_v14 = vadd.f32 %v342_v8, %v325_v10 }
  0xee   : > { %v361_v49 = vpop.permute.xlu1 %360 }
  0xef   : > { %v420_v20 = vpop.permute.xlu2 %419 }
  0xf0   : > { %v359_v50 = vpop.permute.xlu0 %358 }
  0xf1   : > { %v364_v9 = vsel %vm362_vm4, %v359_v50, %v361_v49  ;;  %v363_v12 = vsel %vm362_vm4, %v357_v48, %v359_v50 }
  0xf2   : > { %v368_v15 = vadd.f32 %v364_v9, %v347_v11  ;;  %v367_v18 = vadd.f32 %v363_v12, %v346_v14 }
  0xf6   : > { %v382_v53 = vpop.permute.xlu1 %381 }
  0xf8   : > { %v380_v57 = vpop.permute.xlu0 %379 }
  0xf9   : > { %v385_v13 = vsel %vm383_vm5, %v380_v57, %v382_v53  ;;  %v384_v16 = vsel %vm383_vm5, %v378_v51, %v380_v57 }
  0xfa   : > { %v389_v19 = vadd.f32 %v385_v13, %v368_v15  ;;  %v388_v23 = vadd.f32 %v384_v16, %v367_v18 }
  0xfe   : > { %v403_v0 = vpop.permute.xlu1 %402 }
 0x100   : > { %v401_v6 = vpop.permute.xlu0 %400 }
 0x101   : > { %v406_v17 = vsel %vm404_vm6, %v401_v6, %v403_v0  ;;  %v405_v22 = vsel %vm404_vm6, %v399_v61, %v401_v6 }
 0x102   : > { %v410_v24 = vadd.f32 %v406_v17, %v389_v19  ;;  %v409_v28 = vadd.f32 %v405_v22, %v388_v23 }
 0x106   : > { %v424_v21 = vpop.permute.xlu1 %423 }
 0x108   : > { %v422_v25 = vpop.permute.xlu0 %421 }
 0x109   : > { %v426_v26 = vsel %vm425_vm7, %v420_v20, %v422_v25  ;;  %v427_v27 = vsel %vm425_vm7, %v422_v25, %v424_v21 }
 0x10a   : > { %v431_v29 = vadd.f32 %v427_v27, %v410_v24  ;;  %v430_v30 = vadd.f32 %v426_v26, %v409_v28 }
 0x10c   : > { %v434_v31 = vrot.slane %v431_v29, 6 }
 0x10e   : > { %v436_v32 = vsel %vm435_vm8, %v430_v30, %v434_v31 }
 0x10f   : > { %438 = vst [vmem:[%s247_s22] sm:$0xf] %v436_v32 }
 0x110   : > { %795 = shalt.err (!%p792_p6)
}
 0x111   : > { %607 = dma.vmem_to_hbm [thread:$0]  (%p973_p12), %s454_s26, 64, %s456_s11, %s440_s0  }
 0x112 PF: > { %p627_p2 = scmp.ge.s32.totalorder %s866_s18, 2  ;;  %s467_s10 = sand.u32 1, %s854_s15  }
 0x113   : > { %s468_s30 = scalar_lea.sflag [#allocation4], %s467_s10 }
 0x114   : > { %p621_p8 = pnand %p627_p2, %p980_p3 }
 0x116   : > { %p622_p10 = pneg %p621_p8 }
 0x118   : > { %837 = dma.done.wait (%p622_p10), %s468_s30, 64  }
 0x119   : > { %839 = vsyncadd (%p622_p10), %s468_s30, 4294967232  ;;  %p20_p12 = scmp.ge.s32.totalorder %s952_s25, 9   ;;  %s1163_s12 = smov %s846_s13 }
 0x11a   : > { %s1164_s13 = smov %s850_s14  ;;  %s1165_s14 = smov %s1026_s21 }
 0x11b   : > { %s1166_s15 = smov %s858_s16  ;;  %s1167_s16 = smov %s862_s17 }
 0x11c   : > { %s1168_s17 = smov %s963_s29  ;;  %s1169_s18 = smov %s952_s25 }
 0x11d   :  { %22 = sbr.rel (!%p20_p12) target bundleno = 12 (0xc), region = 95 }
 0x122   :  { %474 = vsyncpa [#allocation3], 1 }
 0x123   :  { %476 = vsyncpa [#allocation3 + $0x1], 1 }
 0x124   :  { %477 = vsyncpa [#allocation8], 1 }
 0x125   :  { %479 = vsyncpa [#allocation8 + $0x1], 1 }
 0x126   :  { %480 = vsyncpa [#allocation4], 1 }
 0x127   :  { %482 = vsyncpa [#allocation4 + $0x1], 1 }
 0x128   :  { %483 = vsyncpa [#allocation5], 1 }
 0x129   :  { %485 = vsyncpa [#allocation5 + $0x1], 1 }

</bundles_post_ra>
